<compile_context>
chip_gen: v5e
topology: v5e:2x2
jax: 0.10.0
libtpu: 0.0.40
codegen_flags: <defaults>
</compile_context>

<pallas_src>
import functools

import jax
import jax.numpy as jnp
from jax import lax
from jax.experimental import pallas as pl
from jax.experimental.pallas import tpu as pltpu

_NEG_BIG = -1e30  # finite "-inf" so no inf/NaN arithmetic ever occurs


def _lbmil_kernel(x_ref, wd_ref, wc_ref, bcr_ref, bcc_ref,      # inputs
                  y_ref, outc_ref, alpha_ref,                   # outputs
                  u_sc, m_sc, t_sc, acc_sc,                     # scratch
                  *, n_valid, tm):
    i = pl.program_id(0)
    nt = pl.num_programs(0)

    @pl.when(i == 0)
    def _init():
        m_sc[...] = jnp.full_like(m_sc, _NEG_BIG)   # running max of u
        t_sc[...] = jnp.zeros_like(t_sc)            # running sum of exp(u - m)
        acc_sc[...] = jnp.zeros_like(acc_sc)        # running sum exp(u - m) * out_c

    # ---- DimReduction: med = ReLU(x @ Wd^T)  (bf16 inputs, f32 accumulate, MXU)
    med = lax.dot_general(x_ref[...], wd_ref[...],
                          (((1,), (1,)), ((), ())),
                          preferred_element_type=jnp.float32)
    med = jnp.maximum(med, 0.0)                     # [TM, D_inner] f32

    wc = wc_ref[...]                                # [C, D_inner] f32

    # ---- classifier logits, row-major for the out_c output
    out_c = lax.dot_general(med, wc, (((1,), (1,)), ((), ())),
                            preferred_element_type=jnp.float32) + bcr_ref[...]
    outc_ref[...] = out_c                           # [TM, C]

    # ---- same (tiny) matmul in transposed orientation so the per-instance
    #      softmax statistics are lane-major (no relayout / masked stores).
    out_ct = lax.dot_general(wc, med, (((1,), (1,)), ((), ())),
                             preferred_element_type=jnp.float32) + bcc_ref[...]
    # per-instance logsumexp over classes (stable), lane-major [1, TM]
    r = jnp.max(out_ct, axis=0, keepdims=True)
    u = r + jnp.log(jnp.sum(jnp.exp(out_ct - r), axis=0, keepdims=True))

    # mask instances beyond the real bag size (zero-padded tail of the last tile)
    idx = i * tm + lax.broadcasted_iota(jnp.int32, (1, tm), 1)
    u = jnp.where(idx < n_valid, u, _NEG_BIG)
    u_sc[pl.ds(i, 1), :] = u

    # ---- online softmax-over-instances accumulation
    m_old = m_sc[...]                                           # [1, 1]
    m_new = jnp.maximum(m_old, jnp.max(u, keepdims=True))       # [1, 1]
    corr = jnp.exp(m_old - m_new)
    w = jnp.exp(u - m_new)                                      # [1, TM]
    t_sc[...] = t_sc[...] * corr + jnp.sum(w, keepdims=True)
    acc_sc[...] = acc_sc[...] * corr + jnp.dot(
        w, out_c, preferred_element_type=jnp.float32)           # [1, C]
    m_sc[...] = m_new

    # ---- finalize: alpha_i = exp(u_i - m) / t ; y = sum_i alpha_i * out_c_i
    @pl.when(i == nt - 1)
    def _finalize():
        inv_t = 1.0 / t_sc[...]
        y_ref[...] = acc_sc[...] * inv_t
        alpha_ref[...] = jnp.exp(u_sc[...] - m_sc[...]) * inv_t


def lbmil_forward(x, wd, wc, bc, *, block_n=128):
    """x: [1, N, D_feat]; wd: [D_inner, D_feat]; wc: [C, D_inner]; bc: [C].

    block_n: instance-tile size (multiple of 128). For large bags pick the
    largest tile that fits scoped VMEM (~<=2048 on v7x/v5e, larger on v6e).
    """
    x0 = x[0]                                    # glue: matches `x = x[0]`
    n, d_feat = x0.shape
    d_inner = wd.shape[0]
    n_class = wc.shape[0]

    tm = block_n
    num_tiles = pl.cdiv(n, tm)
    n_pad = num_tiles * tm

    xb = x0.astype(jnp.bfloat16)                 # bf16 feed -> half the HBM read
    if n_pad != n:
        xb = jnp.pad(xb, ((0, n_pad - n), (0, 0)))
    wdb = wd.astype(jnp.bfloat16)
    wcf = wc.astype(jnp.float32)
    bcr = bc.reshape(1, n_class).astype(jnp.float32)   # row-layout bias
    bcc = bc.reshape(n_class, 1).astype(jnp.float32)   # col-layout bias

    kernel = functools.partial(_lbmil_kernel, n_valid=n, tm=tm)

    y, out_c_pad, alpha_pad = pl.pallas_call(
        kernel,
        out_shape=(
            jax.ShapeDtypeStruct((1, n_class), jnp.float32),        # y
            jax.ShapeDtypeStruct((n_pad, n_class), jnp.float32),    # out_c (padded)
            jax.ShapeDtypeStruct((num_tiles, tm), jnp.float32),     # alpha (lane-dense)
        ),
        grid_spec=pltpu.PrefetchScalarGridSpec(
            num_scalar_prefetch=0,
            grid=(num_tiles,),
            in_specs=[
                pl.BlockSpec((tm, d_feat), lambda i: (i, 0)),        # x tile (bf16)
                pl.BlockSpec((d_inner, d_feat), lambda i: (0, 0)),   # Wd (bf16)
                pl.BlockSpec((n_class, d_inner), lambda i: (0, 0)),  # Wc (f32)
                pl.BlockSpec((1, n_class), lambda i: (0, 0)),        # bc row
                pl.BlockSpec((n_class, 1), lambda i: (0, 0)),        # bc col
            ],
            out_specs=[
                pl.BlockSpec((1, n_class), lambda i: (0, 0)),        # y (resident)
                pl.BlockSpec((tm, n_class), lambda i: (i, 0)),       # out_c per tile
                pl.BlockSpec((num_tiles, tm), lambda i: (0, 0)),     # alpha (resident)
            ],
            scratch_shapes=[
                pltpu.VMEM((num_tiles, tm), jnp.float32),   # u (per-instance lse)
                pltpu.VMEM((1, 1), jnp.float32),            # running max
                pltpu.VMEM((1, 1), jnp.float32),            # running denominator
                pltpu.VMEM((1, n_class), jnp.float32),      # running y numerator
            ],
        ),
        compiler_params=pltpu.CompilerParams(
            dimension_semantics=("arbitrary",),   # sequential online accumulation
            vmem_limit_bytes=32 * 1024 * 1024,
        ),
    )(xb, wdb, wcf, bcr, bcc)

    alpha = alpha_pad.reshape(-1)[:n]    # row-major flatten == instance order
    out_c = out_c_pad[:n]
    return y, out_c, alpha               # matches (y, out_c, squeeze(alpha))


def _reference(x, wd, wc, bc):
    """Pure-JAX reference (original formulation) on bf16-rounded x/Wd."""
    x0 = x[0].astype(jnp.bfloat16).astype(jnp.float32)
    wdf = wd.astype(jnp.bfloat16).astype(jnp.float32)
    med = jnp.maximum(x0 @ wdf.T, 0.0)
    out_c = med @ wc.T + bc
    e = jnp.exp(out_c - out_c.max())
    s = e.sum(axis=1, keepdims=True)
    alpha = s / s.sum(axis=0)
    ctx = med * (x0.shape[0] * alpha)
    pooled = ctx.mean(axis=0, keepdims=True)
    y = pooled @ wc.T + bc
    return y, out_c, jnp.squeeze(alpha)


if __name__ == "__main__":
    # Small config: N=300 instances (ragged vs TM=128 -> exercises padding/mask),
    # D_feat=128, D_inner=64, n_class=4.
    N, D_FEAT, D_INNER, N_CLASS = 300, 128, 64, 4

    key = jax.random.PRNGKey(0)
    kx, kwd, kwc, kbc = jax.random.split(key, 4)

    x = jax.random.normal(kx, (1, N, D_FEAT), dtype=jnp.float32)
    wd = jax.random.normal(kwd, (D_INNER, D_FEAT), dtype=jnp.float32) * 0.05
    wc = jax.random.normal(kwc, (N_CLASS, D_INNER), dtype=jnp.float32) * 0.05
    bc = jax.random.normal(kbc, (N_CLASS,), dtype=jnp.float32) * 0.01

    y, out_c, alpha = jax.block_until_ready(lbmil_forward(x, wd, wc, bc))

    y_ref, out_c_ref, alpha_ref = _reference(x, wd, wc, bc)
    assert y.shape == (1, N_CLASS) and out_c.shape == (N, N_CLASS) and alpha.shape == (N,)
    assert jnp.allclose(out_c, out_c_ref, atol=1e-4, rtol=1e-3), "out_c mismatch"
    assert jnp.allclose(alpha, alpha_ref, atol=1e-6, rtol=1e-4), "alpha mismatch"
    assert jnp.allclose(y, y_ref, atol=1e-4, rtol=1e-3), "y mismatch"
    assert jnp.isclose(jnp.sum(alpha), 1.0, atol=1e-5)

    print("KERNEL_OK")
</pallas_src>

<mosaic_0001>
module attributes {stable_mosaic.version = 11 : i64} {
  func.func @_lbmil_kernel(%arg0: i32, %arg1: memref<128x128xbf16, #tpu.memory_space<vmem>>, %arg2: memref<64x128xbf16, #tpu.memory_space<vmem>>, %arg3: memref<4x64xf32, #tpu.memory_space<vmem>>, %arg4: memref<1x4xf32, #tpu.memory_space<vmem>>, %arg5: memref<4x1xf32, #tpu.memory_space<vmem>>, %arg6: memref<1x4xf32, #tpu.memory_space<vmem>>, %arg7: memref<128x4xf32, #tpu.memory_space<vmem>>, %arg8: memref<3x128xf32, #tpu.memory_space<vmem>>, %arg9: memref<3x128xf32, #tpu.memory_space<vmem>>, %arg10: memref<1x1xf32, #tpu.memory_space<vmem>>, %arg11: memref<1x1xf32, #tpu.memory_space<vmem>>, %arg12: memref<1x4xf32, #tpu.memory_space<vmem>>) attributes {dimension_semantics = [#tpu.dimension_semantics<arbitrary>], iteration_bounds = array<i64: 3>, scalar_prefetch = 0 : i64, scratch_operands = 4 : i64, tpu.core_type = #tpu.core_type<tc>, window_params = [{transform_indices = @transform_0, window_bounds = array<i64: 128, 128>}, {pipeline_mode = #tpu.pipeline_mode<synchronous>, transform_indices = @transform_1, window_bounds = array<i64: 64, 128>}, {pipeline_mode = #tpu.pipeline_mode<synchronous>, transform_indices = @transform_2, window_bounds = array<i64: 4, 64>}, {pipeline_mode = #tpu.pipeline_mode<synchronous>, transform_indices = @transform_3, window_bounds = array<i64: 1, 4>}, {pipeline_mode = #tpu.pipeline_mode<synchronous>, transform_indices = @transform_4, window_bounds = array<i64: 4, 1>}, {pipeline_mode = #tpu.pipeline_mode<synchronous>, transform_indices = @transform_5, window_bounds = array<i64: 1, 4>}, {transform_indices = @transform_6, window_bounds = array<i64: 128, 4>}, {pipeline_mode = #tpu.pipeline_mode<synchronous>, transform_indices = @transform_7, window_bounds = array<i64: 3, 128>}]} {
    %c0_i32 = arith.constant 0 : i32
    %0 = arith.cmpi eq, %arg0, %c0_i32 : i32
    %1 = arith.extui %0 : i1 to i32
    %c0_i32_0 = arith.constant 0 : i32
    %2 = arith.cmpi ne, %1, %c0_i32_0 : i32
    scf.if %2 {
      %cst_35 = arith.constant -1.000000e+30 : f32
      %68 = vector.broadcast %cst_35 : f32 to vector<1x1xf32>
      %c0_36 = arith.constant 0 : index
      %c0_37 = arith.constant 0 : index
      %69 = vector.load %arg10[%c0_36, %c0_37] : memref<1x1xf32, #tpu.memory_space<vmem>>, vector<1x1xf32>
      tpu.vector_store %arg10[%c0_36, %c0_37], %68 {strides = array<i32>} : memref<1x1xf32, #tpu.memory_space<vmem>>, vector<1x1xf32>,
      %cst_38 = arith.constant 0.000000e+00 : f32
      %70 = vector.broadcast %cst_38 : f32 to vector<1x1xf32>
      %c0_39 = arith.constant 0 : index
      %c0_40 = arith.constant 0 : index
      %71 = vector.load %arg11[%c0_39, %c0_40] : memref<1x1xf32, #tpu.memory_space<vmem>>, vector<1x1xf32>
      tpu.vector_store %arg11[%c0_39, %c0_40], %70 {strides = array<i32>} : memref<1x1xf32, #tpu.memory_space<vmem>>, vector<1x1xf32>,
      %cst_41 = arith.constant 0.000000e+00 : f32
      %72 = vector.broadcast %cst_41 : f32 to vector<1x4xf32>
      %c0_42 = arith.constant 0 : index
      %c0_43 = arith.constant 0 : index
      %73 = vector.load %arg12[%c0_42, %c0_43] : memref<1x4xf32, #tpu.memory_space<vmem>>, vector<1x4xf32>
      tpu.vector_store %arg12[%c0_42, %c0_43], %72 {strides = array<i32>} : memref<1x4xf32, #tpu.memory_space<vmem>>, vector<1x4xf32>,
    } else {
    }
    %c0 = arith.constant 0 : index
    %c0_1 = arith.constant 0 : index
    %3 = vector.load %arg1[%c0, %c0_1] : memref<128x128xbf16, #tpu.memory_space<vmem>>, vector<128x128xbf16>
    %c0_2 = arith.constant 0 : index
    %c0_3 = arith.constant 0 : index
    %4 = vector.load %arg2[%c0_2, %c0_3] : memref<64x128xbf16, #tpu.memory_space<vmem>>, vector<64x128xbf16>
    %cst = arith.constant dense<0.000000e+00> : vector<128x64xf32>
    %5 = tpu.matmul %3, %4, %cst {dimension_numbers = #tpu.dot_dimension_numbers<[1], [1], [0], [0], [0, 0, 1, 0], [], []>} : vector<128x128xbf16>, vector<64x128xbf16>, vector<128x64xf32> -> vector<128x64xf32>
    %cst_4 = arith.constant 0.000000e+00 : f32
    %6 = vector.broadcast %cst_4 : f32 to vector<128x64xf32>
    %7 = arith.maximumf %5, %6 : vector<128x64xf32>
    %c0_5 = arith.constant 0 : index
    %c0_6 = arith.constant 0 : index
    %8 = vector.load %arg3[%c0_5, %c0_6] : memref<4x64xf32, #tpu.memory_space<vmem>>, vector<4x64xf32>
    %cst_7 = arith.constant dense<0.000000e+00> : vector<128x4xf32>
    %9 = tpu.matmul %7, %8, %cst_7 {dimension_numbers = #tpu.dot_dimension_numbers<[1], [1], [0], [0], [0, 0, 1, 0], [], []>} : vector<128x64xf32>, vector<4x64xf32>, vector<128x4xf32> -> vector<128x4xf32>
    %c0_8 = arith.constant 0 : index
    %c0_9 = arith.constant 0 : index
    %10 = vector.load %arg4[%c0_8, %c0_9] : memref<1x4xf32, #tpu.memory_space<vmem>>, vector<1x4xf32>
    %11 = vector.broadcast %10 : vector<1x4xf32> to vector<128x4xf32>
    %12 = arith.addf %9, %11 : vector<128x4xf32>
    %c0_10 = arith.constant 0 : index
    %c0_11 = arith.constant 0 : index
    %13 = vector.load %arg7[%c0_10, %c0_11] : memref<128x4xf32, #tpu.memory_space<vmem>>, vector<128x4xf32>
    tpu.vector_store %arg7[%c0_10, %c0_11], %12 {strides = array<i32>} : memref<128x4xf32, #tpu.memory_space<vmem>>, vector<128x4xf32>,
    %cst_12 = arith.constant dense<0.000000e+00> : vector<4x128xf32>
    %14 = tpu.matmul %8, %7, %cst_12 {dimension_numbers = #tpu.dot_dimension_numbers<[1], [1], [0], [0], [0, 0, 1, 0], [], []>} : vector<4x64xf32>, vector<128x64xf32>, vector<4x128xf32> -> vector<4x128xf32>
    %c0_13 = arith.constant 0 : index
    %c0_14 = arith.constant 0 : index
    %15 = vector.load %arg5[%c0_13, %c0_14] : memref<4x1xf32, #tpu.memory_space<vmem>>, vector<4x1xf32>
    %16 = vector.broadcast %15 : vector<4x1xf32> to vector<4x128xf32>
    %17 = arith.addf %14, %16 : vector<4x128xf32>
    %cst_15 = arith.constant dense<0xFF800000> : vector<128xf32>
    %18 = vector.multi_reduction <maximumf>, %17, %cst_15 [0] : vector<4x128xf32> to vector<128xf32>
    %19 = vector.shape_cast %18 : vector<128xf32> to vector<1x128xf32>
    %20 = vector.broadcast %19 : vector<1x128xf32> to vector<4x128xf32>
    %21 = arith.subf %17, %20 : vector<4x128xf32>
    %22 = math.exp %21 : vector<4x128xf32>
    %cst_16 = arith.constant dense<0.000000e+00> : vector<128xf32>
    %23 = vector.multi_reduction <add>, %22, %cst_16 [0] : vector<4x128xf32> to vector<128xf32>
    %24 = vector.shape_cast %23 : vector<128xf32> to vector<1x128xf32>
    %25 = math.log %24 : vector<1x128xf32>
    %26 = arith.addf %19, %25 : vector<1x128xf32>
    %c128_i32 = arith.constant 128 : i32
    %27 = arith.muli %arg0, %c128_i32 : i32
    %28 = tpu.iota {dimensions = array<i32: 1>} : vector<1x128xi32>
    %29 = vector.broadcast %27 : i32 to vector<1x128xi32>
    %30 = arith.addi %29, %28 : vector<1x128xi32>
    %c300_i32 = arith.constant 300 : i32
    %31 = vector.broadcast %c300_i32 : i32 to vector<1x128xi32>
    %32 = arith.cmpi slt, %30, %31 : vector<1x128xi32>
    %cst_17 = arith.constant -1.000000e+30 : f32
    %33 = vector.broadcast %cst_17 : f32 to vector<1x128xf32>
    %34 = arith.select %32, %26, %33 : vector<1x128xi1>, vector<1x128xf32>
    %35 = arith.index_cast %arg0 : i32 to index
    %c0_18 = arith.constant 0 : index
    %36 = vector.load %arg9[%35, %c0_18] : memref<3x128xf32, #tpu.memory_space<vmem>>, vector<1x128xf32>
    tpu.vector_store %arg9[%35, %c0_18], %34 {strides = array<i32>} : memref<3x128xf32, #tpu.memory_space<vmem>>, vector<1x128xf32>,
    %c0_19 = arith.constant 0 : index
    %c0_20 = arith.constant 0 : index
    %37 = vector.load %arg10[%c0_19, %c0_20] : memref<1x1xf32, #tpu.memory_space<vmem>>, vector<1x1xf32>
    %38 = vector.shape_cast %34 : vector<1x128xf32> to vector<1x1x128xf32>
    %cst_21 = arith.constant dense<0xFF800000> : vector<1xf32>
    %39 = vector.multi_reduction <maximumf>, %38, %cst_21 [1, 2] : vector<1x1x128xf32> to vector<1xf32>
    %40 = vector.shape_cast %39 : vector<1xf32> to vector<1x1x1xf32>
    %41 = vector.extract %40[0, 0, 0] : f32 from vector<1x1x1xf32>
    %42 = vector.broadcast %41 : f32 to vector<1x1xf32>
    %43 = arith.maximumf %37, %42 : vector<1x1xf32>
    %44 = arith.subf %37, %43 : vector<1x1xf32>
    %45 = math.exp %44 : vector<1x1xf32>
    %46 = vector.broadcast %43 : vector<1x1xf32> to vector<1x128xf32>
    %47 = arith.subf %34, %46 : vector<1x128xf32>
    %48 = math.exp %47 : vector<1x128xf32>
    %c0_22 = arith.constant 0 : index
    %c0_23 = arith.constant 0 : index
    %49 = vector.load %arg11[%c0_22, %c0_23] : memref<1x1xf32, #tpu.memory_space<vmem>>, vector<1x1xf32>
    %50 = arith.mulf %49, %45 : vector<1x1xf32>
    %51 = vector.shape_cast %48 : vector<1x128xf32> to vector<1x1x128xf32>
    %cst_24 = arith.constant dense<0.000000e+00> : vector<1xf32>
    %52 = vector.multi_reduction <add>, %51, %cst_24 [1, 2] : vector<1x1x128xf32> to vector<1xf32>
    %53 = vector.shape_cast %52 : vector<1xf32> to vector<1x1x1xf32>
    %54 = vector.extract %53[0, 0, 0] : f32 from vector<1x1x1xf32>
    %55 = vector.broadcast %54 : f32 to vector<1x1xf32>
    %56 = arith.addf %50, %55 : vector<1x1xf32>
    %c0_25 = arith.constant 0 : index
    %c0_26 = arith.constant 0 : index
    %57 = vector.load %arg11[%c0_25, %c0_26] : memref<1x1xf32, #tpu.memory_space<vmem>>, vector<1x1xf32>
    tpu.vector_store %arg11[%c0_25, %c0_26], %56 {strides = array<i32>} : memref<1x1xf32, #tpu.memory_space<vmem>>, vector<1x1xf32>,
    %c0_27 = arith.constant 0 : index
    %c0_28 = arith.constant 0 : index
    %58 = vector.load %arg12[%c0_27, %c0_28] : memref<1x4xf32, #tpu.memory_space<vmem>>, vector<1x4xf32>
    %59 = vector.broadcast %45 : vector<1x1xf32> to vector<1x4xf32>
    %60 = arith.mulf %58, %59 : vector<1x4xf32>
    %cst_29 = arith.constant dense<0.000000e+00> : vector<1x4xf32>
    %61 = tpu.matmul %48, %12, %cst_29 {dimension_numbers = #tpu.dot_dimension_numbers<[1], [0], [0], [1], [0, 0, 1, 1], [], []>} : vector<1x128xf32>, vector<128x4xf32>, vector<1x4xf32> -> vector<1x4xf32>
    %62 = arith.addf %60, %61 : vector<1x4xf32>
    %c0_30 = arith.constant 0 : index
    %c0_31 = arith.constant 0 : index
    %63 = vector.load %arg12[%c0_30, %c0_31] : memref<1x4xf32, #tpu.memory_space<vmem>>, vector<1x4xf32>
    tpu.vector_store %arg12[%c0_30, %c0_31], %62 {strides = array<i32>} : memref<1x4xf32, #tpu.memory_space<vmem>>, vector<1x4xf32>,
    %c0_32 = arith.constant 0 : index
    %c0_33 = arith.constant 0 : index
    %64 = vector.load %arg10[%c0_32, %c0_33] : memref<1x1xf32, #tpu.memory_space<vmem>>, vector<1x1xf32>
    tpu.vector_store %arg10[%c0_32, %c0_33], %43 {strides = array<i32>} : memref<1x1xf32, #tpu.memory_space<vmem>>, vector<1x1xf32>,
    %c2_i32 = arith.constant 2 : i32
    %65 = arith.cmpi eq, %arg0, %c2_i32 : i32
    %66 = arith.extui %65 : i1 to i32
    %c0_i32_34 = arith.constant 0 : i32
    %67 = arith.cmpi ne, %66, %c0_i32_34 : i32
    scf.if %67 {
      %c0_35 = arith.constant 0 : index
      %c0_36 = arith.constant 0 : index
      %68 = vector.load %arg11[%c0_35, %c0_36] : memref<1x1xf32, #tpu.memory_space<vmem>>, vector<1x1xf32>
      %cst_37 = arith.constant 1.000000e+00 : f32
      %69 = vector.broadcast %cst_37 : f32 to vector<1x1xf32>
      %70 = arith.divf %69, %68 : vector<1x1xf32>
      %c0_38 = arith.constant 0 : index
      %c0_39 = arith.constant 0 : index
      %71 = vector.load %arg12[%c0_38, %c0_39] : memref<1x4xf32, #tpu.memory_space<vmem>>, vector<1x4xf32>
      %72 = vector.broadcast %70 : vector<1x1xf32> to vector<1x4xf32>
      %73 = arith.mulf %71, %72 : vector<1x4xf32>
      %c0_40 = arith.constant 0 : index
      %c0_41 = arith.constant 0 : index
      %74 = vector.load %arg6[%c0_40, %c0_41] : memref<1x4xf32, #tpu.memory_space<vmem>>, vector<1x4xf32>
      tpu.vector_store %arg6[%c0_40, %c0_41], %73 {strides = array<i32>} : memref<1x4xf32, #tpu.memory_space<vmem>>, vector<1x4xf32>,
      %c0_42 = arith.constant 0 : index
      %c0_43 = arith.constant 0 : index
      %75 = vector.load %arg9[%c0_42, %c0_43] : memref<3x128xf32, #tpu.memory_space<vmem>>, vector<3x128xf32>
      %c0_44 = arith.constant 0 : index
      %c0_45 = arith.constant 0 : index
      %76 = vector.load %arg10[%c0_44, %c0_45] : memref<1x1xf32, #tpu.memory_space<vmem>>, vector<1x1xf32>
      %77 = vector.broadcast %76 : vector<1x1xf32> to vector<3x128xf32>
      %78 = arith.subf %75, %77 : vector<3x128xf32>
      %79 = math.exp %78 : vector<3x128xf32>
      %80 = vector.broadcast %70 : vector<1x1xf32> to vector<3x128xf32>
      %81 = arith.mulf %79, %80 : vector<3x128xf32>
      %c0_46 = arith.constant 0 : index
      %c0_47 = arith.constant 0 : index
      %82 = vector.load %arg8[%c0_46, %c0_47] : memref<3x128xf32, #tpu.memory_space<vmem>>, vector<3x128xf32>
      tpu.vector_store %arg8[%c0_46, %c0_47], %81 {strides = array<i32>} : memref<3x128xf32, #tpu.memory_space<vmem>>, vector<3x128xf32>,
    } else {
    }
    return
  }
  func.func @transform_0(%arg0: i32) -> (i32, i32) {
    %c0_i32 = arith.constant 0 : i32
    %c0_i32_0 = arith.constant 0 : i32
    return %arg0, %c0_i32 : i32, i32
  }
  func.func @transform_1(%arg0: i32) -> (i32, i32) {
    %c0_i32 = arith.constant 0 : i32
    %c0_i32_0 = arith.constant 0 : i32
    %c0_i32_1 = arith.constant 0 : i32
    return %c0_i32, %c0_i32_0 : i32, i32
  }
  func.func @transform_2(%arg0: i32) -> (i32, i32) {
    %c0_i32 = arith.constant 0 : i32
    %c0_i32_0 = arith.constant 0 : i32
    %c0_i32_1 = arith.constant 0 : i32
    return %c0_i32, %c0_i32_0 : i32, i32
  }
  func.func @transform_3(%arg0: i32) -> (i32, i32) {
    %c0_i32 = arith.constant 0 : i32
    %c0_i32_0 = arith.constant 0 : i32
    %c0_i32_1 = arith.constant 0 : i32
    return %c0_i32, %c0_i32_0 : i32, i32
  }
  func.func @transform_4(%arg0: i32) -> (i32, i32) {
    %c0_i32 = arith.constant 0 : i32
    %c0_i32_0 = arith.constant 0 : i32
    %c0_i32_1 = arith.constant 0 : i32
    return %c0_i32, %c0_i32_0 : i32, i32
  }
  func.func @transform_5(%arg0: i32) -> (i32, i32) {
    %c0_i32 = arith.constant 0 : i32
    %c0_i32_0 = arith.constant 0 : i32
    %c0_i32_1 = arith.constant 0 : i32
    return %c0_i32, %c0_i32_0 : i32, i32
  }
  func.func @transform_6(%arg0: i32) -> (i32, i32) {
    %c0_i32 = arith.constant 0 : i32
    %c0_i32_0 = arith.constant 0 : i32
    return %arg0, %c0_i32 : i32, i32
  }
  func.func @transform_7(%arg0: i32) -> (i32, i32) {
    %c0_i32 = arith.constant 0 : i32
    %c0_i32_0 = arith.constant 0 : i32
    %c0_i32_1 = arith.constant 0 : i32
    return %c0_i32, %c0_i32_0 : i32, i32
  }
}

</mosaic_0001>

<bundles_post_ra>
// kernel: tpu_custom_call.1
= control target key start
LH: loop header
LB: loop body
LE: loop exit
PB: predicated region body
PF: predicated region fallthrough
CT: control target
= control target key end

     0   :  { %13 = vsyncpa [#allocation7], 0  ;;  %s1612_s0 = inlined_call_operand.hbm [shape: bf16[384,128], index: 0, kind: input, shape index: {}]   ;;  %s1613_s1 = inlined_call_operand.hbm [shape: bf16[64,128], index: 1, kind: input, shape index: {}]   ;;  %s1614_s2 = inlined_call_operand.vmem [shape: f32[4,64], index: 2, kind: input, shape index: {}]   ;;  %s1615_s3 = inlined_call_operand.vmem [shape: f32[1,4], index: 3, kind: input, shape index: {}]   ;;  %s1616_s4 = inlined_call_operand.vmem [shape: f32[4,1], index: 4, kind: input, shape index: {}]   ;;  %s1617_s5 = inlined_call_operand.hbm [shape: f32[1,4], index: 5, kind: output, shape index: {0}]   ;;  %s1618_s6 = inlined_call_operand.vmem [shape: f32[384,4], index: 6, kind: output, shape index: {1}]   ;;  %s1619_s7 = inlined_call_operand.hbm [shape: f32[3,128], index: 7, kind: output, shape index: {2}]  }
   0x1   :  { %15 = vsyncpa [#allocation7 + $0x1], 0 }
   0x2   :  { %16 = vsyncpa [#allocation10], 0 }
   0x3   :  { %17 = vsyncpa [#allocation8], 0 }
   0x4   :  { %18 = vsyncpa [#allocation13], 0  ;;  %s1356_s24 = smov 0   ;;  %s1358_s25 = smov 0  }
   0x5   :  { %s1360_s26 = smov 0   ;;  %s1362_s27 = smov 0  }
   0x6 LB: > { %s1375_s28 = sadd.s32 4294967295, %s1305_s27   ;;  %p44_p0 = scmp.ne.s32.totalorder %s1297_s25, %s1293_s24  ;;  %s1305_s27 = sphi %s1362_s27, %s1626_s27   ;;  %s1301_s26 = sphi %s1360_s26, %s1625_s26   ;;  %s1297_s25 = sphi %s1358_s25, %s1624_s25   ;;  %s1293_s24 = sphi %s1356_s24, %s1623_s24  }
   0x7   : > { %p45_p1 = scmp.eq.s32.totalorder %s1375_s28, 0  ;;  %p927_p2 = scmp.ge.s32.totalorder %s1305_s27, 1 }
   0x8   : > { %p207_p3 = scmp.lt.s32.totalorder %s1305_s27, 4  ;;  %p928_p4 = scmp.ne.s32.totalorder %s1375_s28, 0 }
   0x9   : > { %p1384_p5 = por %p45_p1, %p44_p0  ;;  %s218_s9 = sshll.u32 %s1613_s1, 4  ;;  %s219_s9 = int_to_ptr.hbm [resolvable:$true] %s218_s9 }
   0xa   : > { %p1391_p6 = pnand %p927_p2, %p207_p3  ;;  %s1307_s11 = smov [#allocation9]  }
   0xb   : > { %s220_s12 = sshll.u32 %s1307_s11, 4  ;;  %s1400_s13 = sadd.s32 1, %s1305_s27   ;;  %s221_s12 = int_to_ptr.vmem [resolvable:$true] %s220_s12 }
   0xc   : > { %p1068_p7 = pneg %p1391_p6  ;;  %s1308_s14 = smov 64  }
   0xd   : > { %s1309_s15 = smov 4   ;;  %s28_s16 = ssub.s32 %s1305_s27, %s1400_s13 }
   0xe   : > { %p1069_p8 = pnand %p1068_p7, %p45_p1  ;;  %s31_s17 = sadd.s32 1, %s1301_s26 }
   0xf   : > { %p29_p9 = scmp.eq.s32.totalorder %s28_s16, 0  ;;  %p38_p10 = scmp.ne.s32.totalorder %s1301_s26, %s1297_s25 }
  0x10   : > { %1071 = dma.hbm_to_vmem [thread:$0]  (!%p1069_p8), %s219_s9, 512, %s221_s12, [#allocation10], %s1308_s14, %s1308_s14, %s1309_s15  }
  0x11   : > { %p39_p11 = scmp.eq.s32.totalorder %s1305_s27, 0  ;;  %p1077_p12 = scmp.lt.s32.totalorder %s1305_s27, 3 }
  0x12   : > { %s1413_s18 = scalar_select %p29_p9, %s1301_s26, %s31_s17  }
  0x13   : > { %p40_p13 = por %p39_p11, %p38_p10  ;;  %s243_s19 = sand.u32 1, %s1301_s26  }
  0x14   : > { %s930_s20 = sshll.u32 %s243_s19, 6  ;;  %s1030_s21 = sshll.u32 %s1305_s27, 6 }
  0x15   : > { %s252_s24 = scalar_lea.hbm %s1612_s0, %s1030_s21  ;;  %s247_s30 = scalar_lea.vmem [#allocation6], %s930_s20 }
  0x16   : > { %s255_s8 = sshll.u32 %s247_s30, 4  ;;  %s253_s11 = sshll.u32 %s252_s24, 4  ;;  %s256_s8 = int_to_ptr.vmem [resolvable:$true] %s255_s8  ;;  %s254_s11 = int_to_ptr.hbm [resolvable:$true] %s253_s11 }
  0x17   : > { %p1420_p0 = pnand %p1077_p12, %p40_p13  ;;  %s244_s12 = scalar_lea.sflag [#allocation7], %s243_s19 }
  0x18   : > { %s1173_s16 = sshra.s32 %s254_s11, 4  ;;  %s1180_s22 = scalar_lea.hbm %s1612_s0, 192  ;;  %s1174_s16 = int_to_ptr.hbm [resolvable:$true] %s1173_s16 }
  0x19   : > { %s1175_s17 = scalar_lea.hbm %s1174_s16, 64  ;;  %p1177_p3 = pneg %p1420_p0 }
  0x1a   : > { %p1176_p2 = scmp.ne.s32.totalorder %s1174_s16, %s1175_s17  ;;  %p1181_p9 = scmp.lt.s32.totalorder %s1174_s16, %s1612_s0 }
  0x1b   : > { %p1182_p10 = scmp.lt.s32.totalorder %s1180_s22, %s1175_s17 }
  0x1c   : > { %p1178_p7 = pnand %p1177_p3, %p1176_p2 }
  0x1d   : > { %p1183_p11 = por %p1182_p10, %p1181_p9 }
  0x1e   : > { %p1179_p8 = pneg %p1178_p7 }
  0x20   : > { %p1184_p12 = pnand %p1183_p11, %p1179_p8 }
  0x22   : > { %1187 = shalt.err (!%p1184_p12)
}
  0x23   : > { %1075 = dma.hbm_to_vmem [thread:$0]  (!%p1420_p0), %s254_s11, 1024, %s256_s8, %s244_s12, %s1308_s14, %s1308_s14, %s1309_s15  }
  0x24   : > { %267 = sbr.rel (%p1391_p6) target bundleno = 1143 (0x477), region = 40  ;;  %s269_s19 = sand.u32 (!%p1391_p6), 1, %s1297_s25  }
  0x25   : > { %s934_s30 = sshll.u32 (!%p1391_p6), %s269_s19, 6  ;;  %s270_s21 = scalar_lea.sflag (!%p1391_p6), [#allocation7], %s269_s19 }
  0x26   : > { %s1440_s20 = scalar_lea.vmem (!%p1391_p6), [#allocation6], %s934_s30 }
  0x29   : > { %1276 = dma.done.wait (%p1384_p5), %s270_s21, 1024  }
  0x2a   : > { %1278 = vsyncadd (%p1384_p5), %s270_s21, 4294966272 }
  0x2b   : > { %1280 = dma.done.wait (%p45_p1), [#allocation10], 512  }
  0x2c   : > { %1282 = vsyncadd (%p45_p1), [#allocation10], 4294966784  ;;  %s936_s10 = sshll.u32 %s1375_s28, 4 }
  0x2d   : > { %p312_p6 = scmp.lt.s32.totalorder %s936_s10, 47  ;;  %321 = sbr.rel (%p928_p4) target bundleno = 54 (0x36), region = 52 }
  0x2f   : > { %s1628_s10 = smov (!%p312_p6, %s936_s10), 47 }
  0x30   : > { %s937_s14 = sshll.u32 %s1628_s10, 3 }
  0x31   : > { %s1454_s11 = scalar_lea.vmem %s1618_s6, %s937_s14 }
  0x32   : > { %vm322_vm0 = vcmask 0   ;;  %vm325_vm1 = vcmask 24576   ;;  %v1310_v0 = vmov -1e+30   ;;  %v1311_v1 = vmov 0.0  }
  0x33   : > { %323 = vst.msk [vmem:[#allocation3] sm:$0x1] %vm322_vm0, %v1310_v0 }
  0x34   : > { %324 = vst.msk [vmem:[#allocation4] sm:$0x1] %vm322_vm0, %v1311_v1 }
  0x35   : > { %326 = vst.msk [vmem:[#allocation5] sm:$0x1] %vm325_vm1, %v1311_v1 }
  0x36 PF: > { %v1042_v2 = vld [vmem:[#allocation9 + $0x18] sm:$0xff]  ;;  %v1041_v3 = vld [vmem:[#allocation9 + $0x10] sm:$0xff]  ;;  %v1040_v4 = vld [vmem:[#allocation9 + $0x8] sm:$0xff]  ;;  %vm493_vm2 = vcmask 523264   ;;  %v1312_v47 = vmov 0   ;;  %vm610_vm3 = vcmask 31744  }
  0x37   : > { %427 = vmatpush.bf16.xpose.msra.mxu0 %v1042_v2  ;;  %1046 = vmatpush.bf16.xpose.msra.mxu3 %v1042_v2  ;;  %v1039_v5 = vld [vmem:[#allocation9] sm:$0xff]  ;;  %v1036_v7 = vld [vmem:[%s1440_s20 + $0x28] sm:$0xff]  ;;  %v1037_v9 = vld [vmem:[%s1440_s20 + $0x30] sm:$0xff]  ;;  %vm653_vm4 = vcmask 1043456   ;;  %s1021_s23 = sshll.u32 %s1375_s28, 7  ;;  %s1043_s24 = scalar_lea.vmem [#allocation2], %s1305_s27 }
  0x38   : > { %v1031_v6 = vld [vmem:[%s1440_s20] sm:$0xff]  ;;  %v1032_v8 = vld [vmem:[%s1440_s20 + $0x8] sm:$0xff]  ;;  %v1033_v10 = vld [vmem:[%s1440_s20 + $0x10] sm:$0xff]  ;;  %1124 = vset.pattern.permute.xlu0 %v1312_v47  ;;  %1125 = vset.pattern.permute.xlu1 %v1312_v47  ;;  %vm716_vm6 = vcmask 0   ;;  %vm703_vm7 = vcmask 1040384   ;;  %vm747_vm8 = vcmask 24576  }
  0x39   : > { %v1038_v11 = vld [vmem:[%s1440_s20 + $0x38] sm:$0xff]  ;;  %v1035_v13 = vld [vmem:[%s1440_s20 + $0x20] sm:$0xff]  ;;  %1126 = vset.pattern.permute.xlu2 %v1312_v47  ;;  %p1023_p1 = scmp.ne.s32.totalorder %s1375_s28, 2 }
  0x3a   : > { %v1034_v12 = vld [vmem:[%s1440_s20 + $0x18] sm:$0xff] }
  0x3b   : > { %v1469_v14 = vld [vmem:[%s1614_s2] sm:$0xf]  ;;  %v683_v47 = vld [vmem:[#allocation3] sm:$0x1] }
  0x3c   : > { %987 = vmatpush.xpose.msk.msra.mxu1 %vm493_vm2, %v1469_v14  ;;  %v627_v48 = vld [vmem:[%s1616_s4] sm:$0xf] }
  0x3d   : > { %630 = vperm.xlu0 %1124, %v627_v48   ;;  %v1127_v49 = vld [vmem:[%s1615_s3] ss:$0 sm:$0xff] }
  0x3f   : > { %428 = vmatpush.bf16.xpose.msra.mxu0 %v1041_v3  ;;  %1047 = vmatpush.bf16.xpose.msra.mxu3 %v1041_v3 }
  0x47   : > { %429 = vmatpush.bf16.xpose.msra.mxu0 %v1040_v4  ;;  %1048 = vmatpush.bf16.xpose.msra.mxu3 %v1040_v4 }
  0x4f   : > { %430 = vmatpush.bf16.xpose.msra.mxu0 %v1039_v5  ;;  %1049 = vmatpush.bf16.xpose.msra.mxu3 %v1039_v5 }
  0x56   : > { %431 = vmatmul.bf16.vlgmr.msra.gmra.mxu0 %v1031_v6  ;;  %456 = vmatmul.bf16.vlgmr.msra.gmra.mxu3 %v1036_v7 }
  0x66   : > { %436 = vmatmul.bf16.gmra.mxu0 %v1032_v8  ;;  %461 = vmatmul.bf16.gmra.mxu3 %v1037_v9 }
  0x76   : > { %441 = vmatmul.bf16.gmra.mxu0 %v1033_v10  ;;  %466 = vmatmul.bf16.gmra.mxu3 %v1038_v11 }
  0x86   : > { %446 = vmatmul.bf16.gmra.mxu0 %v1034_v12 }
  0x96   : > { %451 = vmatmul.bf16.gmra.mxu0 %v1035_v13 }
  0xd3   : > { %v1473_v15 = vpop.f32.mrf.mxu0 }
  0xd4   : > { %v472_v16 = vmax.f32 %v1473_v15, 0.0 }
  0xd6   : > { %988 = vmatmul.msk.f32.vlgmr.msra.gmra.mxu1 %vm493_vm2, %v472_v16 }
  0xd9   : > { %v457_v17 = vpop.f32.mrf.mxu3 }
  0xda   : > { %v482_v44 = vmax.f32 %v457_v17, 0.0 }
  0xdb   : > { %v1479_v18 = vpop.f32.mrf.mxu0 }
  0xdc   : > { %v473_v19 = vmax.f32 %v1479_v18, 0.0 }
  0xde   : > { %989 = vmatmul.msk.f32.gmra.mxu1 %vm493_vm2, %v473_v19 }
  0xe1   : > { %v459_v20 = vpop.f32.mrf.mxu3 }
  0xe2   : > { %v483_v41 = vmax.f32 %v459_v20, 0.0 }
  0xe3   : > { %v437_v21 = vpop.f32.mrf.mxu0 }
  0xe4   : > { %v474_v22 = vmax.f32 %v437_v21, 0.0 }
  0xe6   : > { %990 = vmatmul.msk.f32.gmra.mxu1 %vm493_vm2, %v474_v22 }
  0xe9   : > { %v462_v23 = vpop.f32.mrf.mxu3 }
  0xea   : > { %v484_v40 = vmax.f32 %v462_v23, 0.0 }
  0xeb   : > { %v439_v24 = vpop.f32.mrf.mxu0 }
  0xec   : > { %v475_v25 = vmax.f32 %v439_v24, 0.0 }
  0xee   : > { %991 = vmatmul.msk.f32.gmra.mxu1 %vm493_vm2, %v475_v25 }
  0xf1   : > { %v464_v26 = vpop.f32.mrf.mxu3 }
  0xf2   : > { %v485_v37 = vmax.f32 %v464_v26, 0.0 }
  0xf3   : > { %v442_v27 = vpop.f32.mrf.mxu0 }
  0xf4   : > { %v476_v28 = vmax.f32 %v442_v27, 0.0 }
  0xf6   : > { %992 = vmatmul.msk.f32.gmra.mxu1 %vm493_vm2, %v476_v28 }
  0xf9   : > { %v467_v29 = vpop.f32.mrf.mxu3 }
  0xfa   : > { %v486_v36 = vmax.f32 %v467_v29, 0.0 }
  0xfb   : > { %v444_v30 = vpop.f32.mrf.mxu0 }
  0xfc   : > { %v477_v31 = vmax.f32 %v444_v30, 0.0 }
  0xfe   : > { %993 = vmatmul.msk.f32.gmra.mxu1 %vm493_vm2, %v477_v31 }
 0x101   : > { %v469_v32 = vpop.f32.mrf.mxu3 }
 0x102   : > { %v487_v33 = vmax.f32 %v469_v32, 0.0 }
 0x103   : > { %v447_v34 = vpop.f32.mrf.mxu0 }
 0x104   : > { %v478_v35 = vmax.f32 %v447_v34, 0.0  ;;  %1004 = vmatpush.xpose.msk.msra.mxu2 %vm493_vm2, %v487_v33 }
 0x106   : > { %994 = vmatmul.msk.f32.gmra.mxu1 %vm493_vm2, %v478_v35 }
 0x108   : > { %1005 = vmatpush.xpose.msk.msra.mxu2 %vm493_vm2, %v486_v36 }
 0x10b   : > { %v449_v38 = vpop.f32.mrf.mxu0 }
 0x10c   : > { %v479_v39 = vmax.f32 %v449_v38, 0.0  ;;  %1006 = vmatpush.xpose.msk.msra.mxu2 %vm493_vm2, %v485_v37 }
 0x10e   : > { %995 = vmatmul.msk.f32.gmra.mxu1 %vm493_vm2, %v479_v39 }
 0x110   : > { %1007 = vmatpush.xpose.msk.msra.mxu2 %vm493_vm2, %v484_v40 }
 0x113   : > { %v452_v42 = vpop.f32.mrf.mxu0 }
 0x114   : > { %v480_v43 = vmax.f32 %v452_v42, 0.0  ;;  %1008 = vmatpush.xpose.msk.msra.mxu2 %vm493_vm2, %v483_v41 }
 0x116   : > { %996 = vmatmul.msk.f32.gmra.mxu1 %vm493_vm2, %v480_v43 }
 0x118   : > { %1009 = vmatpush.xpose.msk.msra.mxu2 %vm493_vm2, %v482_v44 }
 0x11b   : > { %v454_v45 = vpop.f32.mrf.mxu0 }
 0x11c   : > { %v481_v46 = vmax.f32 %v454_v45, 0.0 }
 0x11e   : > { %997 = vmatmul.msk.f32.gmra.mxu1 %vm493_vm2, %v481_v46  ;;  %1010 = vmatpush.xpose.msk.msra.mxu2 %vm493_vm2, %v481_v46 }
 0x122   : > { %1011 = vmatpush.xpose.msk.msra.mxu2 %vm493_vm2, %v480_v43 }
 0x126   : > { %998 = vmatmul.msk.f32.gmra.mxu1 %vm493_vm2, %v482_v44  ;;  %1012 = vmatpush.xpose.msk.msra.mxu2 %vm493_vm2, %v479_v39 }
 0x12a   : > { %1013 = vmatpush.xpose.msk.msra.mxu2 %vm493_vm2, %v478_v35 }
 0x12e   : > { %999 = vmatmul.msk.f32.gmra.mxu1 %vm493_vm2, %v483_v41  ;;  %1014 = vmatpush.xpose.msk.msra.mxu2 %vm493_vm2, %v477_v31 }
 0x132   : > { %1015 = vmatpush.xpose.msk.msra.mxu2 %vm493_vm2, %v476_v28 }
 0x136   : > { %1000 = vmatmul.msk.f32.gmra.mxu1 %vm493_vm2, %v484_v40  ;;  %1016 = vmatpush.xpose.msk.msra.mxu2 %vm493_vm2, %v475_v25  ;;  %v677_v40 = vstv %s1021_s23 }
 0x13a   : > { %1017 = vmatpush.xpose.msk.msra.mxu2 %vm493_vm2, %v474_v22 }
 0x13e   : > { %1001 = vmatmul.msk.f32.gmra.mxu1 %vm493_vm2, %v485_v37  ;;  %1018 = vmatpush.xpose.msk.msra.mxu2 %vm493_vm2, %v473_v19  ;;  %v675_v37 = vlaneseq }
 0x140   : > { %v676_v39 = vand.u32 127, %v675_v37 }
 0x142   : > { %1019 = vmatpush.xpose.msk.msra.mxu2 %vm493_vm2, %v472_v16  ;;  %v631_v16 = vpop.permute.xlu0 %630  ;;  %v678_v41 = vadd.s32 %v677_v40, %v676_v39 }
 0x144   : > { %vm679_vm5 = vcmp.lt.s32.totalorder %v678_v41, 300 }
 0x145   : > { %1020 = vmatmul.msk.f32.vlgmr.msra.gmra.mxu2 %vm493_vm2, %v1469_v14 }
 0x146   : > { %1002 = vmatmul.msk.f32.gmra.mxu1 %vm493_vm2, %v486_v36 }
 0x14e   : > { %1003 = vmatmul.msk.f32.gmra.mxu1 %vm493_vm2, %v487_v33 }
 0x153   : > { %v562_v50 = vpop.f32.mrf.mxu1 }
 0x154   : > { %v1523_v51 = vadd.f32 %v1127_v49, %v562_v50 }
 0x156   : > { %611 = vst.msk [vmem:[%s1454_s11] sm:$0xff] %vm610_vm3, %v1523_v51 }
 0x15b   : > { %v565_v52 = vpop.f32.mrf.mxu1 }
 0x15c   : > { %v1528_v53 = vadd.f32 %v1127_v49, %v565_v52 }
 0x15e   : > { %612 = vst.msk [vmem:[%s1454_s11 + $0x8] sm:$0xff] %vm610_vm3, %v1528_v53 }
 0x163   : > { %v568_v54 = vpop.f32.mrf.mxu1 }
 0x164   : > { %v1533_v55 = vadd.f32 %v1127_v49, %v568_v54 }
 0x166   : > { %613 = vst.msk [vmem:[%s1454_s11 + $0x10] sm:$0xff] %vm610_vm3, %v1533_v55 }
 0x16b   : > { %v571_v56 = vpop.f32.mrf.mxu1 }
 0x16c   : > { %v1538_v57 = vadd.f32 %v1127_v49, %v571_v56 }
 0x16e   : > { %614 = vst.msk [vmem:[%s1454_s11 + $0x18] sm:$0xff] %vm610_vm3, %v1538_v57 }
 0x173   : > { %v574_v58 = vpop.f32.mrf.mxu1 }
 0x174   : > { %v575_v59 = vadd.f32 %v1127_v49, %v574_v58 }
 0x176   : > { %615 = vst.msk [vmem:[%s1454_s11 + $0x20] sm:$0xff] %vm610_vm3, %v575_v59 }
 0x17b   : > { %v577_v60 = vpop.f32.mrf.mxu1 }
 0x17c   : > { %v578_v61 = vadd.f32 %v1127_v49, %v577_v60 }
 0x17e   : > { %616 = vst.msk [vmem:[%s1454_s11 + $0x28] sm:$0xff] %vm610_vm3, %v578_v61 }
 0x183   : > { %v580_v62 = vpop.f32.mrf.mxu1 }
 0x184   : > { %v581_v63 = vadd.f32 %v1127_v49, %v580_v62 }
 0x186   : > { %617 = vst.msk [vmem:[%s1454_s11 + $0x30] sm:$0xff] %vm610_vm3, %v581_v63 }
 0x18b   : > { %v583_v0 = vpop.f32.mrf.mxu1 }
 0x18c   : > { %v584_v1 = vadd.f32 %v1127_v49, %v583_v0 }
 0x18e   : > { %618 = vst.msk [vmem:[%s1454_s11 + $0x38] sm:$0xff] %vm610_vm3, %v584_v1 }
 0x193   : > { %v586_v2 = vpop.f32.mrf.mxu1 }
 0x194   : > { %v587_v3 = vadd.f32 %v1127_v49, %v586_v2 }
 0x196   : > { %619 = vst.msk [vmem:[%s1454_s11 + $0x40] sm:$0xff] %vm610_vm3, %v587_v3 }
 0x19b   : > { %v589_v4 = vpop.f32.mrf.mxu1 }
 0x19c   : > { %v590_v5 = vadd.f32 %v1127_v49, %v589_v4 }
 0x19e   : > { %620 = vst.msk [vmem:[%s1454_s11 + $0x48] sm:$0xff] %vm610_vm3, %v590_v5 }
 0x1a3   : > { %v592_v6 = vpop.f32.mrf.mxu1 }
 0x1a4   : > { %v593_v7 = vadd.f32 %v1127_v49, %v592_v6 }
 0x1a6   : > { %621 = vst.msk [vmem:[%s1454_s11 + $0x50] sm:$0xff] %vm610_vm3, %v593_v7 }
 0x1ab   : > { %v595_v8 = vpop.f32.mrf.mxu1 }
 0x1ac   : > { %v596_v9 = vadd.f32 %v1127_v49, %v595_v8  ;;  %v701_v8 = vld [vmem:[#allocation4] sm:$0x1] }
 0x1ae   : > { %622 = vst.msk [vmem:[%s1454_s11 + $0x58] sm:$0xff] %vm610_vm3, %v596_v9 }
 0x1b3   : > { %v598_v10 = vpop.f32.mrf.mxu1 }
 0x1b4   : > { %v599_v11 = vadd.f32 %v1127_v49, %v598_v10 }
 0x1b6   : > { %623 = vst.msk [vmem:[%s1454_s11 + $0x60] sm:$0xff] %vm610_vm3, %v599_v11 }
 0x1bb   : > { %v601_v12 = vpop.f32.mrf.mxu1 }
 0x1bc   : > { %v602_v13 = vadd.f32 %v1127_v49, %v601_v12 }
 0x1be   : > { %624 = vst.msk [vmem:[%s1454_s11 + $0x68] sm:$0xff] %vm610_vm3, %v602_v13 }
 0x1c3   : > { %v604_v14 = vpop.f32.mrf.mxu1 }
 0x1c4   : > { %v605_v15 = vadd.f32 %v1127_v49, %v604_v14 }
 0x1c6   : > { %625 = vst.msk [vmem:[%s1454_s11 + $0x70] sm:$0xff] %vm610_vm3, %v605_v15 }
 0x1c8   : > { %v650_v17 = vpop.f32.mrf.mxu2 }
 0x1c9   : > { %v651_v18 = vadd.f32 %v650_v17, %v631_v16 }
 0x1cb   : > { %v654_v19 = vsel %vm653_vm4, %v651_v18, -inf  ;;  %v607_v20 = vpop.f32.mrf.mxu1 }
 0x1cc   : > { %v655_v21 = vrot.slane %v654_v19, 4  ;;  %v608_v22 = vadd.f32 %v1127_v49, %v607_v20 }
 0x1ce   : > { %v656_v23 = vmax.f32 %v654_v19, %v655_v21  ;;  %626 = vst.msk [vmem:[%s1454_s11 + $0x78] sm:$0xff] %vm610_vm3, %v608_v22  ;;  %726 = vmatpush.msrb.mxu3 %v608_v22 }
 0x1d0   : > { %v657_v24 = vrot.slane %v656_v23, 2  ;;  %727 = vmatpush.msrb.mxu3 %v605_v15 }
 0x1d2   : > { %v658_v25 = vmax.f32 %v656_v23, %v657_v24  ;;  %728 = vmatpush.msrb.mxu3 %v602_v13 }
 0x1d4   : > { %v659_v26 = vrot.slane %v658_v25, 1  ;;  %729 = vmatpush.msrb.mxu3 %v599_v11 }
 0x1d6   : > { %v660_v27 = vmax.f32 %v658_v25, %v659_v26  ;;  %730 = vmatpush.msrb.mxu3 %v596_v9 }
 0x1d8   : > { %v661_v28 = vsub.f32 %v651_v18, %v660_v27  ;;  %731 = vmatpush.msrb.mxu3 %v593_v7 }
 0x1da   : > { %v662_v29 = vmul.f32 1.442695, %v661_v28  ;;  %732 = vmatpush.msrb.mxu3 %v590_v5 }
 0x1dc   : > { %1128 = vpow2.f32 %v662_v29  ;;  %733 = vmatpush.msrb.mxu3 %v587_v3  ;;  %v718_v3 = vld [vmem:[#allocation5] sm:$0x1] }
 0x1de   : > { %734 = vmatpush.msrb.mxu3 %v584_v1 }
 0x1e0   : > { %735 = vmatpush.msrb.mxu3 %v581_v63 }
 0x1e2   : > { %v1129_v30 = vpop.eup %1128  ;;  %736 = vmatpush.msrb.mxu3 %v578_v61 }
 0x1e3   : > { %v664_v31 = vsel %vm653_vm4, %v1129_v30, 0.0 }
 0x1e4   : > { %v665_v32 = vrot.slane %v664_v31, 4  ;;  %737 = vmatpush.msrb.mxu3 %v575_v59 }
 0x1e6   : > { %v666_v33 = vadd.f32 %v665_v32, %v664_v31  ;;  %738 = vmatpush.msrb.mxu3 %v1538_v57 }
 0x1e8   : > { %v667_v34 = vrot.slane %v666_v33, 2  ;;  %739 = vmatpush.msrb.mxu3 %v1533_v55 }
 0x1ea   : > { %v668_v35 = vadd.f32 %v667_v34, %v666_v33  ;;  %740 = vmatpush.msrb.mxu3 %v1528_v53 }
 0x1ec   : > { %v669_v36 = vrot.slane %v668_v35, 1  ;;  %741 = vmatpush.msrb.mxu3 %v1523_v51 }
 0x1ee   : > { %v670_v38 = vadd.f32 %v669_v36, %v668_v35 }
 0x1f0   : > { %1130 = vlog2.f32 %v670_v38 }
 0x1f6   : > { %v1131_v42 = vpop.eup %1130 }
 0x1f7   : > { %v672_v43 = vmul.f32 0.6931472, %v1131_v42 }
 0x1f9   : > { %v673_v44 = vadd.f32 %v672_v43, %v660_v27 }
 0x1fb   : > { %v680_v45 = vsel %vm679_vm5, %v673_v44, -1e+30 }
 0x1fc   : > { %684 = vmax.xlane.f32.xlu0 %v680_v45  ;;  %1045 = vst [vmem:[%s1043_s24 - $0x1] sm:$0x1] %v680_v45 }
 0x26f   : > { %v685_v46 = vpop.xlane.xlu0 %684 }
 0x270   : > { %1050 = vpush %v685_v46 }
 0x2a1   : > { %s1051_s19 = spop %1050 }
 0x2a2   : > { %v687_v48 = vstv %s1051_s19 }
 0x2a3   : > { %v688_v49 = vmax.f32 %v683_v47, %v687_v48 }
 0x2a5   : > { %v689_v50 = vsub.f32 %v683_v47, %v688_v49  ;;  %749 = vst.msk [vmem:[#allocation3] sm:$0x1] %vm716_vm6, %v688_v49  ;;  %694 = vperm.xlu1 %1125, %v688_v49  }
 0x2a7   : > { %v690_v51 = vmul.f32 1.442695, %v689_v50 }
 0x2a9   : > { %1132 = vpow2.f32 %v690_v51 }
 0x2af   : > { %v1133_v52 = vpop.eup %1132 }
 0x2b0   : > { %721 = vperm.xlu2 %1126, %v1133_v52   ;;  %v702_v9 = vmul.f32 %v1133_v52, %v701_v8 }
 0x30a   : > { %v722_v63 = vpop.permute.xlu2 %721 }
 0x30b   : > { %v724_v2 = vperm.slane %v722_v63, 0 }
 0x30d   : > { %v725_v5 = vmul.f32 %v724_v2, %v718_v3 }
 0x317   : > { %v695_v53 = vpop.permute.xlu1 %694 }
 0x318   : > { %v697_v54 = vperm.slane %v695_v53, 0 }
 0x31a   : > { %v698_v55 = vsub.f32 %v680_v45, %v697_v54 }
 0x31c   : > { %v699_v56 = vmul.f32 1.442695, %v698_v55 }
 0x31e   : > { %1134 = vpow2.f32 %v699_v56 }
 0x324   : > { %v1135_v57 = vpop.eup %1134 }
 0x325   : > { %742 = vmatmul.f32.vlgmr.msrb.gmra.mxu3 %v1135_v57  ;;  %v704_v58 = vsel %vm703_vm7, %v1135_v57, 0.0 }
 0x326   : > { %705 = vadd.xlane.f32.xlu1 %v704_v58 }
 0x399   : > { %v706_v59 = vpop.xlane.xlu1 %705 }
 0x39a   : > { %v707_v60 = vrot.slane %v706_v59, 4 }
 0x39c   : > { %v708_v61 = vadd.f32 %v707_v60, %v706_v59 }
 0x39e   : > { %v709_v62 = vrot.slane %v708_v61, 2 }
 0x3a0   : > { %v710_v0 = vadd.f32 %v709_v62, %v708_v61 }
 0x3a2   : > { %v711_v1 = vrot.slane %v710_v0, 1 }
 0x3a4   : > { %v712_v4 = vadd.f32 %v711_v1, %v710_v0 }
 0x3a6   : > { %1052 = vpush %v712_v4 }
 0x3a8   : > { %v743_v6 = vpop.f32.mrf.mxu3 }
 0x3a9   : > { %v746_v7 = vadd.f32 %v743_v6, %v725_v5 }
 0x3ab   : > { %748 = vst.msk [vmem:[#allocation5] sm:$0x1] %vm747_vm8, %v746_v7 }
 0x3d7   : > { %s1053_s27 = spop %1052  ;;  %753 = sbr.rel (%p1023_p1) target bundleno = 1133 (0x46d), region = 56 }
 0x3d8   : > { %v714_v10 = vstv %s1053_s27 }
 0x3d9   : > { %v715_v11 = vadd.f32 %v714_v10, %v702_v9 }
 0x3db   : > { %717 = vst.msk [vmem:[#allocation4] sm:$0x1] %vm716_vm6, %v715_v11 }
 0x3dc   : > { %v1138_v12 = vld [vmem:[#allocation3] ss:$0 sm:$0xff]  ;;  %v1313_v13 = vmov 0   ;;  %v779_v26 = vld [vmem:[#allocation2] sm:$0x7] }
 0x3dd   : > { %1136 = vset.pattern.permute.xlu0 %v1313_v13  ;;  %1137 = vset.pattern.permute.xlu1 %v1313_v13  ;;  %v770_v31 = vld [vmem:[#allocation5] sm:$0x1] }
 0x3de   : > { %784 = vperm.xlu0 %1136, %v1138_v12  }
 0x3e2   : > { %v754_v14 = vld [vmem:[#allocation4] sm:$0x1] }
 0x3e3   : > { %1139 = vrcp.f32 %v754_v14  ;;  %v766_v17 = vand.u32 2147483648, %v754_v14  ;;  %vm760_vm9 = vweird.f32 %v754_v14  ;;  %v764_v19 = vand.u32 2147483647, %v754_v14 }
 0x3e5   : > { %v767_v21 = vor.u32 1.1754944e-38, %v766_v17  ;;  %vm765_vm12 = vcmp.eq.f32.partialorder %v764_v19, 8.507059e+37 }
 0x3e9   : > { %v1140_v15 = vpop.eup %1139 }
 0x3ea   : > { %v756_v16 = vmul.f32 %v1140_v15, %v754_v14  ;;  %vm761_vm10 = vweird.f32 %v1140_v15 }
 0x3eb   : > { %vm762_vm11 = vmor %vm760_vm9, %vm761_vm10 }
 0x3ec   : > { %v757_v18 = vsub.f32 1.0, %v756_v16 }
 0x3ee   : > { %v758_v20 = vmul.f32 %v1140_v15, %v757_v18 }
 0x3f0   : > { %v759_v22 = vadd.f32 %v1140_v15, %v758_v20 }
 0x3f2   : > { %v763_v23 = vsel %vm762_vm11, %v1140_v15, %v759_v22 }
 0x3f3   : > { %v768_v24 = vsel %vm765_vm12, %v767_v21, %v763_v23 }
 0x3f4   : > { %773 = vperm.xlu0 %1136, %v768_v24   ;;  %v790_v25 = vperm.slane %v768_v24, 0 }
 0x3f6   : > { %792 = vperm.xlu1 %1137, %v790_v25  }
 0x450   : > { %v785_v27 = vpop.permute.xlu0 %784 }
 0x451   : > { %v787_v28 = vsub.f32 %v779_v26, %v785_v27 }
 0x453   : > { %v788_v29 = vmul.f32 1.442695, %v787_v28 }
 0x455   : > { %1141 = vpow2.f32 %v788_v29 }
 0x45b   : > { %v1142_v30 = vpop.eup %1141 }
 0x466   : > { %v774_v32 = vpop.permute.xlu0 %773 }
 0x467   : > { %v776_v33 = vperm.slane %v774_v32, 0 }
 0x468   : > { %v793_v34 = vpop.permute.xlu1 %792 }
 0x469   : > { %v777_v35 = vmul.f32 %v776_v33, %v770_v31  ;;  %v795_v36 = vmul.f32 %v1142_v30, %v793_v34 }
 0x46b   : > { %778 = vst.msk [vmem:[#allocation11] sm:$0x1] %vm747_vm8, %v777_v35 }
 0x46c   : > { %796 = vst [vmem:[#allocation12] sm:$0x7] %v795_v36 }
 0x46d PF: > { %p1079_p4 = scmp.eq.s32.totalorder %s1375_s28, 2  ;;  %s1314_s30 = smov [#allocation11]  }
 0x46e   : > { %s808_s21 = sshll.u32 %s1314_s30, 4  ;;  %s810_s14 = sshll.u32 %s1617_s5, 4  ;;  %s809_s21 = int_to_ptr.vmem [resolvable:$true] %s808_s21  ;;  %s811_s14 = int_to_ptr.hbm [resolvable:$true] %s810_s14 }
 0x46f   : > { %1061 = dma.vmem_to_hbm [thread:$0]  (%p1079_p4), %s809_s21, 16, %s811_s14, [#allocation8]  }
 0x470   : > { %s826_s11 = sshll.u32 %s1619_s7, 4  ;;  %s1315_s29 = smov [#allocation12]   ;;  %s827_s11 = int_to_ptr.hbm [resolvable:$true] %s826_s11 }
 0x471   : > { %s824_s9 = sshll.u32 %s1315_s29, 4  ;;  %s825_s9 = int_to_ptr.vmem [resolvable:$true] %s824_s9 }
 0x472   : > { %1063 = dma.vmem_to_hbm [thread:$0]  (%p1079_p4), %s825_s9, 64, %s827_s11, [#allocation13]  }
 0x473   : > { %1284 = dma.done.wait (%p1079_p4), [#allocation8], 16  }
 0x474   : > { %1286 = vsyncadd (%p1079_p4), [#allocation8], 4294967280 }
 0x475   : > { %1288 = dma.done.wait (%p1079_p4), [#allocation13], 64  }
 0x476   : > { %1290 = vsyncadd (%p1079_p4), [#allocation13], 4294967232 }
 0x477 PF: > { %p21_p5 = scmp.ge.s32.totalorder %s1400_s13, 5   ;;  %s1623_s24 = smov %s1297_s25 }
 0x478   : > { %s1624_s25 = smov %s1301_s26  ;;  %s1625_s26 = smov %s1413_s18 }
 0x479   : > { %s1626_s27 = smov %s1400_s13  ;;  %23 = sbr.rel (!%p21_p5) target bundleno = 6 (0x6), region = 110 }
 0x47e   :  { %853 = vsyncpa [#allocation7], 1 }
 0x47f   :  { %855 = vsyncpa [#allocation7 + $0x1], 1 }
 0x480   :  { %856 = vsyncpa [#allocation10], 1 }
 0x481   :  { %857 = vsyncpa [#allocation8], 1 }
 0x482   :  { %859 = vsyncpa [#allocation8 + $0x1], 1 }
 0x483   :  { %860 = vsyncpa [#allocation13], 1 }

</bundles_post_ra>
